<compile_context>
chip_gen: v6e
topology: v6e:2x2x1
jax: 0.10.0
libtpu: 0.0.40
codegen_flags: <defaults>
</compile_context>

<pallas_src>
import functools

import jax
import jax.numpy as jnp
from jax import lax
from jax.experimental import pallas as pl
from jax.experimental.pallas import tpu as pltpu


def _hswish(v):
    # h_swish(x) = x * relu6(x + 3) / 6
    return v * jnp.clip(v + 3.0, 0.0, 6.0) * (1.0 / 6.0)


def ca_attention_kernel(x_ref, p_ref, eh_ref,
                        w1_ref, b1_ref, wh_ref, bh_ref, ww_ref, bw_ref,
                        o_ref, *, H, W, NB):
    # x_ref block: (NB, C, S), S = H*W flattened on lanes (lane-dense).
    p = p_ref[...]          # (S, H+W) bf16  pooling selector
    eh = eh_ref[...]        # (H, S)   bf16  one-hot row expander
    w1 = w1_ref[...]        # (mip, C) bf16  Conv1 (BN folded)
    b1 = b1_ref[...]        # (mip, 1) f32
    wh = wh_ref[...]        # (C, mip) bf16  Conv_h
    bh = bh_ref[...]        # (C, 1)   f32
    ww = ww_ref[...]        # (C, mip) bf16  Conv_w
    bw = bw_ref[...]        # (C, 1)   f32

    for b in range(NB):     # static, unrolled; all matmuls stay clean 2-D
        x = x_ref[b]                                        # (C, S) input dtype
        x_bf = x.astype(jnp.bfloat16)

        # --- pooling: (C, S) @ (S, H+W) == [mean over W | mean over H] ------
        pooled = jnp.dot(x_bf, p, preferred_element_type=jnp.float32)   # (C, H+W) f32

        # --- Conv1 (1x1, BN folded) + h_swish over the concat axis ----------
        y = jnp.dot(w1, pooled.astype(jnp.bfloat16),
                    preferred_element_type=jnp.float32) + b1            # (mip, H+W)
        y = _hswish(y).astype(jnp.bfloat16)
        y_h = y[:, :H]                                      # (mip, H)
        y_w = y[:, H:]                                      # (mip, W)

        # --- Conv_h / Conv_w (1x1) + sigmoid -> attention weights -----------
        a_h = jax.nn.sigmoid(
            jnp.dot(wh, y_h, preferred_element_type=jnp.float32) + bh)  # (C, H) f32
        a_w = jax.nn.sigmoid(
            jnp.dot(ww, y_w, preferred_element_type=jnp.float32) + bw)  # (C, W) f32

        # --- expand to lane-dense (C, S), directly in x.dtype ----------------
        # att_h[c, h*W + w] = a_h[c, h]  (one-hot matmul on the otherwise-idle MXU)
        att_h = jnp.dot(a_h.astype(jnp.bfloat16), eh,
                        preferred_element_type=x.dtype)                 # (C, S)
        # att_w[c, h*W + w] = a_w[c, w]  (lane tile; no matmul, no Ew constant)
        att_w = jnp.tile(a_w.astype(x.dtype), (1, H))                   # (C, S)

        # out = identity * weight_h * weight_w, in the input dtype.
        o_ref[b] = (x * att_h * att_w).astype(o_ref.dtype)


def _layout_matrices(H, W):
    """bf16 selector matrices: pooling (S, H+W) and one-hot row expander (H, S)."""
    S = H * W
    s = jnp.arange(S)
    h_of_s = s // W
    w_of_s = s % W
    p_h = (h_of_s[:, None] == jnp.arange(H)[None, :]).astype(jnp.float32) / float(W)
    p_w = (w_of_s[:, None] == jnp.arange(W)[None, :]).astype(jnp.float32) / float(H)
    P = jnp.concatenate([p_h, p_w], axis=1).astype(jnp.bfloat16)              # (S, H+W)
    Eh = (jnp.arange(H)[:, None] == h_of_s[None, :]).astype(jnp.bfloat16)     # (H, S)
    return P, Eh


def _vmem_capacity_bytes():
    try:
        return int(pltpu.get_tpu_info().vmem_capacity_bytes)
    except Exception:
        return 64 * 1024 * 1024


@jax.jit
def ca_attention(x, w1f, b1f, wh, bh, ww, bw):
    N, C, H, W = x.shape
    S = H * W
    mip = w1f.shape[0]
    # out = identity * weight_h * weight_w requires oup == inp (same as PyTorch).
    assert wh.shape[0] == C and ww.shape[0] == C, "oup must equal inp"

    x_flat = x.reshape(N, C, S)                      # contiguous reshape: free
    P, Eh = _layout_matrices(H, W)

    # bf16 operands for the MXU (f32 accumulation happens inside the kernel).
    w1_bf = w1f.astype(jnp.bfloat16)
    wh_bf = wh.astype(jnp.bfloat16)
    ww_bf = ww.astype(jnp.bfloat16)

    # Block several images per grid step when the per-image block is small.
    img_bytes = C * S * x.dtype.itemsize
    NB = 1
    for cand in range(min(N, 8), 0, -1):
        if N % cand == 0 and cand * img_bytes <= 2 * 1024 * 1024:
            NB = cand
            break
    grid = (N // NB,)

    # Scoped-VMEM budget from the actual working set (clamped to chip capacity).
    const_bytes = ((S * (H + W) + H * S) * 2                 # P, Eh (bf16)
                   + (mip * C + 2 * C * mip) * 2             # bf16 conv weights
                   + (mip + 2 * C) * 4)                      # f32 biases
    tmp_bytes = 2 * NB * C * S * x.dtype.itemsize + 4 * C * (H + W) * 4
    est = 2 * (2 * NB * img_bytes) + 2 * const_bytes + tmp_bytes + (2 << 20)
    cap = _vmem_capacity_bytes()
    vmem_limit = int(min(max(est, 32 * 1024 * 1024),
                         max(cap - 16 * 1024 * 1024, 32 * 1024 * 1024)))

    kernel = pl.pallas_call(
        functools.partial(ca_attention_kernel, H=H, W=W, NB=NB),
        out_shape=jax.ShapeDtypeStruct((N, C, S), x.dtype),
        grid_spec=pltpu.PrefetchScalarGridSpec(
            num_scalar_prefetch=0,
            grid=grid,
            in_specs=[
                # x: NB images per step, spatial flattened -> lane-dense block.
                pl.BlockSpec((NB, C, S), lambda b: (b, 0, 0)),
                # Constant index_map -> these are not re-DMA'd per grid step.
                pl.BlockSpec((S, H + W), lambda b: (0, 0)),   # pooling matrix (bf16)
                pl.BlockSpec((H, S), lambda b: (0, 0)),       # one-hot expand h (bf16)
                pl.BlockSpec((mip, C), lambda b: (0, 0)),     # Conv1 (BN folded, bf16)
                pl.BlockSpec((mip, 1), lambda b: (0, 0)),     # bias1 (BN folded, f32)
                pl.BlockSpec((C, mip), lambda b: (0, 0)),     # Conv_h (bf16)
                pl.BlockSpec((C, 1), lambda b: (0, 0)),       # bias_h (f32)
                pl.BlockSpec((C, mip), lambda b: (0, 0)),     # Conv_w (bf16)
                pl.BlockSpec((C, 1), lambda b: (0, 0)),       # bias_w (f32)
            ],
            out_specs=pl.BlockSpec((NB, C, S), lambda b: (b, 0, 0)),
        ),
        compiler_params=pltpu.CompilerParams(
            dimension_semantics=("parallel",),
            vmem_limit_bytes=vmem_limit,
        ),
    )
    out_flat = kernel(x_flat, P, Eh, w1_bf, b1f, wh_bf, bh, ww_bf, bw)
    return out_flat.reshape(N, C, H, W)


def make_params(key, inp, oup, reduction=32):
    """Deterministic parameter init mimicking CA_Attention.__init__ shapes."""
    mip = max(8, inp // reduction)
    ks = jax.random.split(key, 10)
    p = {}
    p["w1"] = jax.random.normal(ks[0], (mip, inp), jnp.float32) * 0.2
    p["b1"] = jax.random.normal(ks[1], (mip,), jnp.float32) * 0.1
    p["bn_gamma"] = 1.0 + 0.1 * jax.random.normal(ks[2], (mip,), jnp.float32)
    p["bn_beta"] = 0.1 * jax.random.normal(ks[3], (mip,), jnp.float32)
    p["bn_mean"] = 0.05 * jax.random.normal(ks[4], (mip,), jnp.float32)
    p["bn_var"] = jnp.abs(1.0 + 0.1 * jax.random.normal(ks[5], (mip,), jnp.float32))
    p["wh"] = jax.random.normal(ks[6], (oup, mip), jnp.float32) * 0.2
    p["bh"] = jax.random.normal(ks[7], (oup,), jnp.float32) * 0.1
    p["ww"] = jax.random.normal(ks[8], (oup, mip), jnp.float32) * 0.2
    p["bw"] = jax.random.normal(ks[9], (oup,), jnp.float32) * 0.1
    return p, mip


def fold_bn(p, eps=1e-5):
    """Fold eval-mode BN into Conv1 weights/bias."""
    s = p["bn_gamma"] / jnp.sqrt(p["bn_var"] + eps)
    w1f = p["w1"] * s[:, None]
    b1f = (p["b1"] - p["bn_mean"]) * s + p["bn_beta"]
    return w1f, b1f.reshape(-1, 1)


def reference_forward(x, p, eps=1e-5):
    """Pure-JAX f32 reference of CA_Attention.forward (eval-mode BN, h_swish)."""
    N, C, H, W = x.shape
    hi = lax.Precision.HIGHEST
    pool_h = jnp.mean(x, axis=3)                               # (N, C, H)
    pool_w = jnp.mean(x, axis=2)                               # (N, C, W)
    y = jnp.concatenate([pool_h, pool_w], axis=2)              # (N, C, H+W)
    y = jnp.einsum("mc,ncs->nms", p["w1"], y, precision=hi) + p["b1"][None, :, None]
    s = p["bn_gamma"] / jnp.sqrt(p["bn_var"] + eps)
    y = (y - p["bn_mean"][None, :, None]) * s[None, :, None] + p["bn_beta"][None, :, None]
    y = _hswish(y)
    y_h, y_w = y[:, :, :H], y[:, :, H:]
    a_h = jax.nn.sigmoid(jnp.einsum("om,nms->nos", p["wh"], y_h, precision=hi)
                         + p["bh"][None, :, None])             # (N, C, H)
    a_w = jax.nn.sigmoid(jnp.einsum("om,nms->nos", p["ww"], y_w, precision=hi)
                         + p["bw"][None, :, None])             # (N, C, W)
    return x * a_h[:, :, :, None] * a_w[:, :, None, :]


if __name__ == "__main__":
    key = jax.random.PRNGKey(0)
    kx, kp = jax.random.split(key)

    N, C, H, W = 2, 8, 16, 16          # inp == oup so identity*weights broadcasts
    x = jax.random.normal(kx, (N, C, H, W), jnp.float32)

    params, mip = make_params(kp, inp=C, oup=C, reduction=32)
    w1f, b1f = fold_bn(params)
    bh = params["bh"].reshape(-1, 1)
    bw = params["bw"].reshape(-1, 1)

    out = ca_attention(x, w1f, b1f, params["wh"], bh, params["ww"], bw)
    out = jax.block_until_ready(out)

    ref = reference_forward(x, params)
    assert out.shape == (N, C, H, W)
    # bf16 MXU operands (f32 accumulation) -> tolerance loosened vs. pure-f32 ref.
    err = float(jnp.max(jnp.abs(out - ref)))
    assert err < 5e-2, err

    print("KERNEL_OK")
</pallas_src>

<mosaic_0001>
module attributes {stable_mosaic.version = 11 : i64} {
  func.func @ca_attention_kernel(%arg0: i32, %arg1: memref<2x8x256xf32, #tpu.memory_space<vmem>>, %arg2: memref<256x32xbf16, #tpu.memory_space<vmem>>, %arg3: memref<16x256xbf16, #tpu.memory_space<vmem>>, %arg4: memref<8x8xbf16, #tpu.memory_space<vmem>>, %arg5: memref<8x1xf32, #tpu.memory_space<vmem>>, %arg6: memref<8x8xbf16, #tpu.memory_space<vmem>>, %arg7: memref<8x1xf32, #tpu.memory_space<vmem>>, %arg8: memref<8x8xbf16, #tpu.memory_space<vmem>>, %arg9: memref<8x1xf32, #tpu.memory_space<vmem>>, %arg10: memref<2x8x256xf32, #tpu.memory_space<vmem>>) attributes {dimension_semantics = [#tpu.dimension_semantics<parallel>], iteration_bounds = array<i64: 1>, scalar_prefetch = 0 : i64, scratch_operands = 0 : i64, tpu.core_type = #tpu.core_type<tc>, window_params = [{transform_indices = @transform_0, window_bounds = array<i64: 2, 8, 256>}, {pipeline_mode = #tpu.pipeline_mode<synchronous>, transform_indices = @transform_1, window_bounds = array<i64: 256, 32>}, {pipeline_mode = #tpu.pipeline_mode<synchronous>, transform_indices = @transform_2, window_bounds = array<i64: 16, 256>}, {pipeline_mode = #tpu.pipeline_mode<synchronous>, transform_indices = @transform_3, window_bounds = array<i64: 8, 8>}, {pipeline_mode = #tpu.pipeline_mode<synchronous>, transform_indices = @transform_4, window_bounds = array<i64: 8, 1>}, {pipeline_mode = #tpu.pipeline_mode<synchronous>, transform_indices = @transform_5, window_bounds = array<i64: 8, 8>}, {pipeline_mode = #tpu.pipeline_mode<synchronous>, transform_indices = @transform_6, window_bounds = array<i64: 8, 1>}, {pipeline_mode = #tpu.pipeline_mode<synchronous>, transform_indices = @transform_7, window_bounds = array<i64: 8, 8>}, {pipeline_mode = #tpu.pipeline_mode<synchronous>, transform_indices = @transform_8, window_bounds = array<i64: 8, 1>}, {transform_indices = @transform_9, window_bounds = array<i64: 2, 8, 256>}]} {
    %c0 = arith.constant 0 : index
    %c0_0 = arith.constant 0 : index
    %0 = vector.load %arg2[%c0, %c0_0] : memref<256x32xbf16, #tpu.memory_space<vmem>>, vector<256x32xbf16>
    %c0_1 = arith.constant 0 : index
    %c0_2 = arith.constant 0 : index
    %1 = vector.load %arg3[%c0_1, %c0_2] : memref<16x256xbf16, #tpu.memory_space<vmem>>, vector<16x256xbf16>
    %c0_3 = arith.constant 0 : index
    %c0_4 = arith.constant 0 : index
    %2 = vector.load %arg4[%c0_3, %c0_4] : memref<8x8xbf16, #tpu.memory_space<vmem>>, vector<8x8xbf16>
    %c0_5 = arith.constant 0 : index
    %c0_6 = arith.constant 0 : index
    %3 = vector.load %arg5[%c0_5, %c0_6] : memref<8x1xf32, #tpu.memory_space<vmem>>, vector<8x1xf32>
    %c0_7 = arith.constant 0 : index
    %c0_8 = arith.constant 0 : index
    %4 = vector.load %arg6[%c0_7, %c0_8] : memref<8x8xbf16, #tpu.memory_space<vmem>>, vector<8x8xbf16>
    %c0_9 = arith.constant 0 : index
    %c0_10 = arith.constant 0 : index
    %5 = vector.load %arg7[%c0_9, %c0_10] : memref<8x1xf32, #tpu.memory_space<vmem>>, vector<8x1xf32>
    %c0_11 = arith.constant 0 : index
    %c0_12 = arith.constant 0 : index
    %6 = vector.load %arg8[%c0_11, %c0_12] : memref<8x8xbf16, #tpu.memory_space<vmem>>, vector<8x8xbf16>
    %c0_13 = arith.constant 0 : index
    %c0_14 = arith.constant 0 : index
    %7 = vector.load %arg9[%c0_13, %c0_14] : memref<8x1xf32, #tpu.memory_space<vmem>>, vector<8x1xf32>
    %c0_15 = arith.constant 0 : index
    %c0_16 = arith.constant 0 : index
    %c0_17 = arith.constant 0 : index
    %8 = vector.load %arg1[%c0_15, %c0_16, %c0_17] : memref<2x8x256xf32, #tpu.memory_space<vmem>>, vector<1x8x256xf32>
    %9 = vector.shape_cast %8 : vector<1x8x256xf32> to vector<8x256xf32>
    %10 = arith.truncf %9 : vector<8x256xf32> to vector<8x256xbf16>
    %cst = arith.constant dense<0.000000e+00> : vector<8x32xf32>
    %11 = tpu.matmul %10, %0, %cst {dimension_numbers = #tpu.dot_dimension_numbers<[1], [0], [0], [1], [0, 0, 1, 1], [], []>} : vector<8x256xbf16>, vector<256x32xbf16>, vector<8x32xf32> -> vector<8x32xf32>
    %12 = arith.truncf %11 : vector<8x32xf32> to vector<8x32xbf16>
    %cst_18 = arith.constant dense<0.000000e+00> : vector<8x32xf32>
    %13 = tpu.matmul %2, %12, %cst_18 {dimension_numbers = #tpu.dot_dimension_numbers<[1], [0], [0], [1], [0, 0, 1, 1], [], []>} : vector<8x8xbf16>, vector<8x32xbf16>, vector<8x32xf32> -> vector<8x32xf32>
    %14 = vector.broadcast %3 : vector<8x1xf32> to vector<8x32xf32>
    %15 = arith.addf %13, %14 : vector<8x32xf32>
    %cst_19 = arith.constant 3.000000e+00 : f32
    %16 = vector.broadcast %cst_19 : f32 to vector<8x32xf32>
    %17 = arith.addf %15, %16 : vector<8x32xf32>
    %cst_20 = arith.constant 0.000000e+00 : f32
    %cst_21 = arith.constant 6.000000e+00 : f32
    %18 = vector.broadcast %cst_20 : f32 to vector<8x32xf32>
    %19 = arith.maximumf %18, %17 : vector<8x32xf32>
    %20 = vector.broadcast %cst_21 : f32 to vector<8x32xf32>
    %21 = arith.minimumf %20, %19 : vector<8x32xf32>
    %22 = arith.mulf %15, %21 : vector<8x32xf32>
    %cst_22 = arith.constant 0.166666672 : f32
    %23 = vector.broadcast %cst_22 : f32 to vector<8x32xf32>
    %24 = arith.mulf %22, %23 : vector<8x32xf32>
    %25 = arith.truncf %24 : vector<8x32xf32> to vector<8x32xbf16>
    %26 = vector.extract_strided_slice %25 {offsets = [0, 0], sizes = [8, 16], strides = [1, 1]} : vector<8x32xbf16> to vector<8x16xbf16>
    %27 = vector.extract_strided_slice %25 {offsets = [0, 16], sizes = [8, 16], strides = [1, 1]} : vector<8x32xbf16> to vector<8x16xbf16>
    %cst_23 = arith.constant dense<0.000000e+00> : vector<8x16xf32>
    %28 = tpu.matmul %4, %26, %cst_23 {dimension_numbers = #tpu.dot_dimension_numbers<[1], [0], [0], [1], [0, 0, 1, 1], [], []>} : vector<8x8xbf16>, vector<8x16xbf16>, vector<8x16xf32> -> vector<8x16xf32>
    %29 = vector.broadcast %5 : vector<8x1xf32> to vector<8x16xf32>
    %30 = arith.addf %28, %29 : vector<8x16xf32>
    %31 = arith.negf %30 : vector<8x16xf32>
    %32 = math.exp %31 : vector<8x16xf32>
    %cst_24 = arith.constant 1.000000e+00 : f32
    %33 = vector.broadcast %cst_24 : f32 to vector<8x16xf32>
    %34 = arith.addf %33, %32 : vector<8x16xf32>
    %35 = arith.divf %33, %34 : vector<8x16xf32>
    %cst_25 = arith.constant dense<0.000000e+00> : vector<8x16xf32>
    %36 = tpu.matmul %6, %27, %cst_25 {dimension_numbers = #tpu.dot_dimension_numbers<[1], [0], [0], [1], [0, 0, 1, 1], [], []>} : vector<8x8xbf16>, vector<8x16xbf16>, vector<8x16xf32> -> vector<8x16xf32>
    %37 = vector.broadcast %7 : vector<8x1xf32> to vector<8x16xf32>
    %38 = arith.addf %36, %37 : vector<8x16xf32>
    %39 = arith.negf %38 : vector<8x16xf32>
    %40 = math.exp %39 : vector<8x16xf32>
    %cst_26 = arith.constant 1.000000e+00 : f32
    %41 = vector.broadcast %cst_26 : f32 to vector<8x16xf32>
    %42 = arith.addf %41, %40 : vector<8x16xf32>
    %43 = arith.divf %41, %42 : vector<8x16xf32>
    %44 = arith.truncf %35 : vector<8x16xf32> to vector<8x16xbf16>
    %cst_27 = arith.constant dense<0.000000e+00> : vector<8x256xf32>
    %45 = tpu.matmul %44, %1, %cst_27 {dimension_numbers = #tpu.dot_dimension_numbers<[1], [0], [0], [1], [0, 0, 1, 1], [], []>} : vector<8x16xbf16>, vector<16x256xbf16>, vector<8x256xf32> -> vector<8x256xf32>
    %46 = tpu.concatenate %43, %43, %43, %43, %43, %43, %43, %43, %43, %43, %43, %43, %43, %43, %43, %43 in 1 : vector<8x16xf32>, vector<8x16xf32>, vector<8x16xf32>, vector<8x16xf32>, vector<8x16xf32>, vector<8x16xf32>, vector<8x16xf32>, vector<8x16xf32>, vector<8x16xf32>, vector<8x16xf32>, vector<8x16xf32>, vector<8x16xf32>, vector<8x16xf32>, vector<8x16xf32>, vector<8x16xf32>, vector<8x16xf32> -> vector<8x256xf32>
    %47 = arith.mulf %9, %45 : vector<8x256xf32>
    %48 = arith.mulf %47, %46 : vector<8x256xf32>
    %c0_28 = arith.constant 0 : index
    %c0_29 = arith.constant 0 : index
    %c0_30 = arith.constant 0 : index
    %49 = vector.load %arg10[%c0_28, %c0_29, %c0_30] : memref<2x8x256xf32, #tpu.memory_space<vmem>>, vector<1x8x256xf32>
    %50 = vector.shape_cast %49 : vector<1x8x256xf32> to vector<8x256xf32>
    %51 = vector.shape_cast %48 : vector<8x256xf32> to vector<1x8x256xf32>
    tpu.vector_store %arg10[%c0_28, %c0_29, %c0_30], %51 {strides = array<i32>} : memref<2x8x256xf32, #tpu.memory_space<vmem>>, vector<1x8x256xf32>,
    %c1 = arith.constant 1 : index
    %c0_31 = arith.constant 0 : index
    %c0_32 = arith.constant 0 : index
    %52 = vector.load %arg1[%c1, %c0_31, %c0_32] : memref<2x8x256xf32, #tpu.memory_space<vmem>>, vector<1x8x256xf32>
    %53 = vector.shape_cast %52 : vector<1x8x256xf32> to vector<8x256xf32>
    %54 = arith.truncf %53 : vector<8x256xf32> to vector<8x256xbf16>
    %cst_33 = arith.constant dense<0.000000e+00> : vector<8x32xf32>
    %55 = tpu.matmul %54, %0, %cst_33 {dimension_numbers = #tpu.dot_dimension_numbers<[1], [0], [0], [1], [0, 0, 1, 1], [], []>} : vector<8x256xbf16>, vector<256x32xbf16>, vector<8x32xf32> -> vector<8x32xf32>
    %56 = arith.truncf %55 : vector<8x32xf32> to vector<8x32xbf16>
    %cst_34 = arith.constant dense<0.000000e+00> : vector<8x32xf32>
    %57 = tpu.matmul %2, %56, %cst_34 {dimension_numbers = #tpu.dot_dimension_numbers<[1], [0], [0], [1], [0, 0, 1, 1], [], []>} : vector<8x8xbf16>, vector<8x32xbf16>, vector<8x32xf32> -> vector<8x32xf32>
    %58 = vector.broadcast %3 : vector<8x1xf32> to vector<8x32xf32>
    %59 = arith.addf %57, %58 : vector<8x32xf32>
    %cst_35 = arith.constant 3.000000e+00 : f32
    %60 = vector.broadcast %cst_35 : f32 to vector<8x32xf32>
    %61 = arith.addf %59, %60 : vector<8x32xf32>
    %cst_36 = arith.constant 0.000000e+00 : f32
    %cst_37 = arith.constant 6.000000e+00 : f32
    %62 = vector.broadcast %cst_36 : f32 to vector<8x32xf32>
    %63 = arith.maximumf %62, %61 : vector<8x32xf32>
    %64 = vector.broadcast %cst_37 : f32 to vector<8x32xf32>
    %65 = arith.minimumf %64, %63 : vector<8x32xf32>
    %66 = arith.mulf %59, %65 : vector<8x32xf32>
    %cst_38 = arith.constant 0.166666672 : f32
    %67 = vector.broadcast %cst_38 : f32 to vector<8x32xf32>
    %68 = arith.mulf %66, %67 : vector<8x32xf32>
    %69 = arith.truncf %68 : vector<8x32xf32> to vector<8x32xbf16>
    %70 = vector.extract_strided_slice %69 {offsets = [0, 0], sizes = [8, 16], strides = [1, 1]} : vector<8x32xbf16> to vector<8x16xbf16>
    %71 = vector.extract_strided_slice %69 {offsets = [0, 16], sizes = [8, 16], strides = [1, 1]} : vector<8x32xbf16> to vector<8x16xbf16>
    %cst_39 = arith.constant dense<0.000000e+00> : vector<8x16xf32>
    %72 = tpu.matmul %4, %70, %cst_39 {dimension_numbers = #tpu.dot_dimension_numbers<[1], [0], [0], [1], [0, 0, 1, 1], [], []>} : vector<8x8xbf16>, vector<8x16xbf16>, vector<8x16xf32> -> vector<8x16xf32>
    %73 = vector.broadcast %5 : vector<8x1xf32> to vector<8x16xf32>
    %74 = arith.addf %72, %73 : vector<8x16xf32>
    %75 = arith.negf %74 : vector<8x16xf32>
    %76 = math.exp %75 : vector<8x16xf32>
    %cst_40 = arith.constant 1.000000e+00 : f32
    %77 = vector.broadcast %cst_40 : f32 to vector<8x16xf32>
    %78 = arith.addf %77, %76 : vector<8x16xf32>
    %79 = arith.divf %77, %78 : vector<8x16xf32>
    %cst_41 = arith.constant dense<0.000000e+00> : vector<8x16xf32>
    %80 = tpu.matmul %6, %71, %cst_41 {dimension_numbers = #tpu.dot_dimension_numbers<[1], [0], [0], [1], [0, 0, 1, 1], [], []>} : vector<8x8xbf16>, vector<8x16xbf16>, vector<8x16xf32> -> vector<8x16xf32>
    %81 = vector.broadcast %7 : vector<8x1xf32> to vector<8x16xf32>
    %82 = arith.addf %80, %81 : vector<8x16xf32>
    %83 = arith.negf %82 : vector<8x16xf32>
    %84 = math.exp %83 : vector<8x16xf32>
    %cst_42 = arith.constant 1.000000e+00 : f32
    %85 = vector.broadcast %cst_42 : f32 to vector<8x16xf32>
    %86 = arith.addf %85, %84 : vector<8x16xf32>
    %87 = arith.divf %85, %86 : vector<8x16xf32>
    %88 = arith.truncf %79 : vector<8x16xf32> to vector<8x16xbf16>
    %cst_43 = arith.constant dense<0.000000e+00> : vector<8x256xf32>
    %89 = tpu.matmul %88, %1, %cst_43 {dimension_numbers = #tpu.dot_dimension_numbers<[1], [0], [0], [1], [0, 0, 1, 1], [], []>} : vector<8x16xbf16>, vector<16x256xbf16>, vector<8x256xf32> -> vector<8x256xf32>
    %90 = tpu.concatenate %87, %87, %87, %87, %87, %87, %87, %87, %87, %87, %87, %87, %87, %87, %87, %87 in 1 : vector<8x16xf32>, vector<8x16xf32>, vector<8x16xf32>, vector<8x16xf32>, vector<8x16xf32>, vector<8x16xf32>, vector<8x16xf32>, vector<8x16xf32>, vector<8x16xf32>, vector<8x16xf32>, vector<8x16xf32>, vector<8x16xf32>, vector<8x16xf32>, vector<8x16xf32>, vector<8x16xf32>, vector<8x16xf32> -> vector<8x256xf32>
    %91 = arith.mulf %53, %89 : vector<8x256xf32>
    %92 = arith.mulf %91, %90 : vector<8x256xf32>
    %c1_44 = arith.constant 1 : index
    %c0_45 = arith.constant 0 : index
    %c0_46 = arith.constant 0 : index
    %93 = vector.load %arg10[%c1_44, %c0_45, %c0_46] : memref<2x8x256xf32, #tpu.memory_space<vmem>>, vector<1x8x256xf32>
    %94 = vector.shape_cast %93 : vector<1x8x256xf32> to vector<8x256xf32>
    %95 = vector.shape_cast %92 : vector<8x256xf32> to vector<1x8x256xf32>
    tpu.vector_store %arg10[%c1_44, %c0_45, %c0_46], %95 {strides = array<i32>} : memref<2x8x256xf32, #tpu.memory_space<vmem>>, vector<1x8x256xf32>,
    return
  }
  func.func @transform_0(%arg0: i32) -> (i32, i32, i32) {
    %c0_i32 = arith.constant 0 : i32
    %c0_i32_0 = arith.constant 0 : i32
    %c0_i32_1 = arith.constant 0 : i32
    return %arg0, %c0_i32, %c0_i32_0 : i32, i32, i32
  }
  func.func @transform_1(%arg0: i32) -> (i32, i32) {
    %c0_i32 = arith.constant 0 : i32
    %c0_i32_0 = arith.constant 0 : i32
    %c0_i32_1 = arith.constant 0 : i32
    return %c0_i32, %c0_i32_0 : i32, i32
  }
  func.func @transform_2(%arg0: i32) -> (i32, i32) {
    %c0_i32 = arith.constant 0 : i32
    %c0_i32_0 = arith.constant 0 : i32
    %c0_i32_1 = arith.constant 0 : i32
    return %c0_i32, %c0_i32_0 : i32, i32
  }
  func.func @transform_3(%arg0: i32) -> (i32, i32) {
    %c0_i32 = arith.constant 0 : i32
    %c0_i32_0 = arith.constant 0 : i32
    %c0_i32_1 = arith.constant 0 : i32
    return %c0_i32, %c0_i32_0 : i32, i32
  }
  func.func @transform_4(%arg0: i32) -> (i32, i32) {
    %c0_i32 = arith.constant 0 : i32
    %c0_i32_0 = arith.constant 0 : i32
    %c0_i32_1 = arith.constant 0 : i32
    return %c0_i32, %c0_i32_0 : i32, i32
  }
  func.func @transform_5(%arg0: i32) -> (i32, i32) {
    %c0_i32 = arith.constant 0 : i32
    %c0_i32_0 = arith.constant 0 : i32
    %c0_i32_1 = arith.constant 0 : i32
    return %c0_i32, %c0_i32_0 : i32, i32
  }
  func.func @transform_6(%arg0: i32) -> (i32, i32) {
    %c0_i32 = arith.constant 0 : i32
    %c0_i32_0 = arith.constant 0 : i32
    %c0_i32_1 = arith.constant 0 : i32
    return %c0_i32, %c0_i32_0 : i32, i32
  }
  func.func @transform_7(%arg0: i32) -> (i32, i32) {
    %c0_i32 = arith.constant 0 : i32
    %c0_i32_0 = arith.constant 0 : i32
    %c0_i32_1 = arith.constant 0 : i32
    return %c0_i32, %c0_i32_0 : i32, i32
  }
  func.func @transform_8(%arg0: i32) -> (i32, i32) {
    %c0_i32 = arith.constant 0 : i32
    %c0_i32_0 = arith.constant 0 : i32
    %c0_i32_1 = arith.constant 0 : i32
    return %c0_i32, %c0_i32_0 : i32, i32
  }
  func.func @transform_9(%arg0: i32) -> (i32, i32, i32) {
    %c0_i32 = arith.constant 0 : i32
    %c0_i32_0 = arith.constant 0 : i32
    %c0_i32_1 = arith.constant 0 : i32
    return %arg0, %c0_i32, %c0_i32_0 : i32, i32, i32
  }
}

</mosaic_0001>

<bundles_post_ra>
// kernel: ca_attention.1
= control target key start
LH: loop header
LB: loop body
LE: loop exit
PB: predicated region body
PF: predicated region fallthrough
CT: control target
= control target key end

     0   :  { %v940_v20 = vmov 0.0   ;;  %vm941_vm0 = vmmov 0   ;;  %v942_v21 = vmov 0   ;;  %vm223_vm1 = vcmask 1043456   ;;  %s945_s16 = smov 32   ;;  %s946_s17 = smov 48   ;;  %s1283_s1 = inlined_call_operand.vmem [shape: bf16[256,32], index: 1, kind: input, shape index: {}]   ;;  %s1284_s0 = inlined_call_operand.vmem [shape: f32[2,8,256], index: 0, kind: input, shape index: {}]   ;;  %s1285_s4 = inlined_call_operand.vmem [shape: f32[8,1], index: 4, kind: input, shape index: {}]   ;;  %s1286_s6 = inlined_call_operand.vmem [shape: f32[8,1], index: 6, kind: input, shape index: {}]   ;;  %s1287_s8 = inlined_call_operand.vmem [shape: f32[8,1], index: 8, kind: input, shape index: {}]   ;;  %s1288_s3 = inlined_call_operand.vmem [shape: bf16[8,8], index: 3, kind: input, shape index: {}]   ;;  %s1289_s5 = inlined_call_operand.vmem [shape: bf16[8,8], index: 5, kind: input, shape index: {}]   ;;  %s1290_s2 = inlined_call_operand.vmem [shape: bf16[16,256], index: 2, kind: input, shape index: {}]   ;;  %s1291_s7 = inlined_call_operand.vmem [shape: bf16[8,8], index: 7, kind: input, shape index: {}]   ;;  %s1292_s9 = inlined_call_operand.vmem [shape: f32[2,8,256], index: 9, kind: output, shape index: {}]  }
   0x1   :  { %v1003_v0 = vld [vmem:[%s1283_s1 + $0x78] sm:$0xff]   ;;  %v1014_v2 = vld [vmem:[%s1283_s1 + $0x70] sm:$0xff]   ;;  %v1026_v4 = vld [vmem:[%s1283_s1 + $0x68] sm:$0xff]   ;;  %858 = vmatprep.subr.bf16.mxu1 %v940_v20  ;;  %860 = vmatprep.mubr.msk.bf16.mxu1 %vm941_vm0, %v940_v20  ;;  %vm219_vm2 = vcmask 64512   ;;  %vm401_vm3 = vcmask 130048   ;;  %s947_s18 = smov 64  }
   0x2   :  { %v1008_v1 = vld [vmem:[%s1283_s1 + $0x38] sm:$0xff]   ;;  %802 = vmatprep.subr.bf16.mxu0 %v1003_v0  ;;  %v1020_v3 = vld [vmem:[%s1283_s1 + $0x30] sm:$0xff]   ;;  %v1032_v5 = vld [vmem:[%s1283_s1 + $0x28] sm:$0xff]   ;;  %904 = vset.pattern.permute.xlu0 %v942_v21  ;;  %s948_s19 = smov 80   ;;  %s949_s20 = smov 96   ;;  %vm469_vm4 = vcmask 261120  }
   0x3   :  { %803 = vmatpush3.bf16.msra.mxu0 %v1008_v1  ;;  %v1038_v6 = vld [vmem:[%s1283_s1 + $0x60] sm:$0xff]   ;;  %v1050_v8 = vld [vmem:[%s1283_s1 + $0x58] sm:$0xff]   ;;  %v1062_v10 = vld [vmem:[%s1283_s1 + $0x50] sm:$0xff]   ;;  %vm471_vm5 = vcmask 392192   ;;  %vm473_vm6 = vcmask 523264   ;;  %vm475_vm7 = vcmask 654336  }
   0x4   :  { %804 = vmatprep.subr.bf16.mxu0 %v1014_v2  ;;  %v1044_v7 = vld [vmem:[%s1283_s1 + $0x20] sm:$0xff]   ;;  %v1056_v9 = vld [vmem:[%s1283_s1 + $0x18] sm:$0xff]   ;;  %v1067_v11 = vld [vmem:[%s1284_s0 + $0x8] sm:$0xff]  ;;  %vm477_vm8 = vcmask 785408   ;;  %vm479_vm9 = vcmask 916480  }
   0x5   :  { %v76_v12 = vpack.c.bf16 %v1067_v11, %v1067_v11  ;;  %v1075_v13 = vld [vmem:[%s1283_s1 + $0x10] sm:$0xff]   ;;  %v1081_v14 = vld [vmem:[%s1283_s1 + $0x48] sm:$0xff]   ;;  %v1093_v16 = vld [vmem:[%s1283_s1 + $0x40] sm:$0xff]  }
   0x6   :  { %v1087_v15 = vld [vmem:[%s1283_s1 + $0x8] sm:$0xff]   ;;  %v1099_v17 = vld [vmem:[%s1283_s1] sm:$0xff]   ;;  %v1180_v61 = vld [vmem:[%s1284_s0 + $0x18] sm:$0xff] }
   0x7   :  { %805 = vmatpush3.bf16.msra.mxu0 %v1020_v3  ;;  %205 = vmatprep.mubr.bf16.mxu0 %v76_v12  ;;  %v1104_v18 = vld [vmem:[%s1284_s0] sm:$0xff]  ;;  %v491_v63 = vpack.c.bf16 %v1180_v61, %v1180_v61 }
   0x8   :  { %806 = vmatprep.subr.bf16.mxu0 %v1026_v4  ;;  %v75_v19 = vpack.c.bf16 %v1104_v18, %v1104_v18  ;;  %v68_v22 = vld [vmem:[%s1285_s4] sm:$0xff] }
   0x9   :  { %216 = vperm.xlu0 %904, %v68_v22   ;;  %v70_v23 = vld [vmem:[%s1286_s6] sm:$0xff] }
   0xa   :  { %v72_v24 = vld [vmem:[%s1287_s8] sm:$0xff] }
   0xb   :  { %807 = vmatpush3.bf16.msra.mxu0 %v1032_v5  ;;  %v1130_v32 = vld [vmem:[%s1288_s3] sm:$0xf]  ;;  %s943_s3 = smov 112   ;;  %v1155_v47 = vld [vmem:[%s1290_s2 + $0x4] ss:$8 sps:$4 sm:$0xff]  }
   0xc   :  { %808 = vmatprep.subr.bf16.mxu0 %v1038_v6  ;;  %v1145_v46 = vld [vmem:[%s1289_s5] sm:$0xf] }
   0xd   :  { %275 = vperm.xlu0 %904, %v70_v23   ;;  %v1161_v50 = vld [vmem:[%s1291_s7] sm:$0xf] }
   0xe   :  { %v1166_v51 = vld [vmem:[%s1290_s2] ss:$8 sps:$4 sm:$0xff]  }
   0xf   :  { %809 = vmatpush3.bf16.msra.mxu0 %v1044_v7 }
  0x10   :  { %810 = vmatprep.subr.bf16.mxu0 %v1050_v8 }
  0x11   :  { %332 = vperm.xlu0 %904, %v72_v24  }
  0x13   :  { %811 = vmatpush3.bf16.msra.mxu0 %v1056_v9 }
  0x14   :  { %812 = vmatprep.subr.bf16.mxu0 %v1062_v10 }
  0x17   :  { %813 = vmatpush3.bf16.msra.mxu0 %v1075_v13 }
  0x18   :  { %814 = vmatprep.subr.bf16.mxu0 %v1081_v14 }
  0x1b   :  { %815 = vmatpush3.bf16.msra.mxu0 %v1087_v15 }
  0x1c   :  { %816 = vmatprep.subr.bf16.mxu0 %v1093_v16 }
  0x1f   :  { %817 = vmatpush3.bf16.msra.mxu0 %v1099_v17 }
  0x20   :  { %876 = vmatprep.subr.bf16.mxu0 %v940_v20 }
  0x22   :  { %206 = vmatmul.mubr.bf16.vlgmr.msra.gmra.mxu0 %v75_v19 }
  0x23   :  { %878 = vmatprep.mubr.msk.bf16.mxu0 %vm941_vm0, %v940_v20 }
  0x84   :  { %v1137_v33 = vpop.permute.xlu0 %216 }
  0x88   :  { %v1174_v52 = vpop.permute.xlu0 %275 }
  0xe2   :  { %v818_v25 = vpop.f32.mrf.mxu0 }
  0xe4   :  { %v819_v26 = vpop.f32.mrf.mxu0 }
  0xe5   :  { %v820_v27 = vadd.f32 %v819_v26, %v818_v25 }
  0xe6   :  { %v821_v28 = vpop.f32.mrf.mxu0 }
  0xe7   :  { %v213_v29 = vpack.c.bf16 %v820_v27, %v820_v27 }
  0xe8   :  { %v822_v30 = vpop.f32.mrf.mxu0 }
  0xe9   :  { %v225_v31 = vsel %vm223_vm1, %v213_v29, 0 }
  0xea   :  { %859 = vmatpush3.bf16.msra.mxu1 %v225_v31 }
  0xeb   :  { %864 = vmatprep.subr.bf16.mxu1 %v940_v20 }
  0xed   :  { %861 = vmatmul.mubr.msk.bf16.vlgmr.msra.gmra.mxu1 %vm219_vm2, %v1130_v32 }
  0xee   :  { %866 = vmatprep.mubr.msk.bf16.mxu1 %vm941_vm0, %v940_v20 }
 0x1ad   :  { %v261_v34 = vpop.f32.mrf.mxu1 }
 0x1ae   :  { %v262_v35 = vadd.f32 %v261_v34, %v1137_v33 }
 0x1af   :  { %v862_v36 = vpop.f32.mrf.mxu1 }
 0x1b0   :  { %v267_v37 = vadd.f32 3.0, %v262_v35 }
 0x1b1   :  { %v264_v38 = vpop.f32.mrf.mxu1 }
 0x1b2   :  { %v268_v39 = vmax.f32 %v267_v37, 0.0 }
 0x1b3   :  { %v863_v40 = vpop.f32.mrf.mxu1 }
 0x1b4   :  { %v269_v41 = vmin.f32 %v268_v39, 6.0 }
 0x1b6   :  { %v270_v42 = vmul.f32 %v269_v41, %v262_v35 }
 0x1b8   :  { %v271_v43 = vmul.f32 0.16666667, %v270_v42 }
 0x1ba   :  { %v272_v44 = vpack.c.bf16 %v271_v43, %v271_v43 }
 0x1bc   :  { %336 = vrot.lane.b32.xlu1 %v272_v44, %s943_s3  ;;  %v282_v45 = vsel %vm223_vm1, %v272_v44, 0 }
 0x1bd   :  { %865 = vmatpush3.bf16.msra.mxu1 %v282_v45 }
 0x1be   :  { %870 = vmatprep.subr.bf16.mxu1 %v940_v20 }
 0x1c0   :  { %867 = vmatmul.mubr.msk.bf16.vlgmr.msra.gmra.mxu1 %vm219_vm2, %v1145_v46 }
 0x1c1   :  { %872 = vmatprep.mubr.msk.bf16.mxu1 %vm941_vm0, %v940_v20 }
 0x22e   :  { %v337_v48 = vpop.permute.xlu1 %336 }
 0x22f   :  { %v342_v49 = vsel %vm223_vm1, %v337_v48, 0 }
 0x230   :  { %871 = vmatpush3.bf16.msra.mxu1 %v342_v49 }
 0x231   :  { %419 = vmatprep.subr.bf16.mxu1 %v1155_v47 }
 0x233   :  { %873 = vmatmul.mubr.msk.bf16.vlgmr.msra.gmra.mxu1 %vm219_vm2, %v1161_v50 }
 0x234   :  { %420 = vmatpush1.bf16.msra.mxu1 %v1166_v51  ;;  %437 = vmatprep.mubr.bf16.mxu1 %v942_v21 }
 0x235   :  { %830 = vmatprep.subr.bf16.mxu1 %v1003_v0 }
 0x280   :  { %v318_v53 = vpop.f32.mrf.mxu1 }
 0x281   :  { %v319_v54 = vadd.f32 %v318_v53, %v1174_v52 }
 0x282   :  { %v868_v55 = vpop.f32.mrf.mxu1 }
 0x283   :  { %v786_v56 = vmul.f32 -1.442695, %v319_v54 }
 0x284   :  { %v321_v57 = vpop.f32.mrf.mxu1 }
 0x285   :  { %924 = vpow2.f32 %v786_v56 }
 0x286   :  { %v869_v58 = vpop.f32.mrf.mxu1 }
 0x292   :  { %v925_v59 = vpop.eup %924 }
 0x293   :  { %v327_v60 = vadd.f32 1.0, %v925_v59 }
 0x295   :  { %926 = vrcp.f32 %v327_v60 }
 0x2a2   :  { %v927_v62 = vpop.eup %926 }
 0x2a3   :  { %v390_v0 = vpack.c.bf16 %v927_v62, %v927_v62 }
 0x2a5   :  { %791 = vmatmul.mubr.msk.bf16.vlgmr.msra.gmra.mxu1 %vm401_vm3, %v390_v0 }
 0x2a6   :  { %831 = vmatpush3.bf16.msra.mxu1 %v1008_v1  ;;  %524 = vmatprep.mubr.bf16.mxu1 %v491_v63  ;;  %v1201_v1 = vld [vmem:[%s1284_s0 + $0x10] sm:$0xff]  ;;  %s944_s0 = smov 16  }
 0x2a7   :  { %832 = vmatprep.subr.bf16.mxu1 %v1014_v2  ;;  %v490_v2 = vpack.c.bf16 %v1201_v1, %v1201_v1 }
 0x2aa   :  { %833 = vmatpush3.bf16.msra.mxu1 %v1020_v3 }
 0x2ab   :  { %834 = vmatprep.subr.bf16.mxu1 %v1026_v4 }
 0x2ae   :  { %835 = vmatpush3.bf16.msra.mxu1 %v1032_v5 }
 0x2af   :  { %836 = vmatprep.subr.bf16.mxu1 %v1038_v6 }
 0x2b2   :  { %837 = vmatpush3.bf16.msra.mxu1 %v1044_v7 }
 0x2b3   :  { %838 = vmatprep.subr.bf16.mxu1 %v1050_v8 }
 0x2b6   :  { %839 = vmatpush3.bf16.msra.mxu1 %v1056_v9 }
 0x2b7   :  { %840 = vmatprep.subr.bf16.mxu1 %v1062_v10 }
 0x2ba   :  { %841 = vmatpush3.bf16.msra.mxu1 %v1075_v13 }
 0x2bb   :  { %842 = vmatprep.subr.bf16.mxu1 %v1081_v14 }
 0x2be   :  { %843 = vmatpush3.bf16.msra.mxu1 %v1087_v15 }
 0x2bf   :  { %844 = vmatprep.subr.bf16.mxu1 %v1093_v16 }
 0x2c2   :  { %845 = vmatpush3.bf16.msra.mxu1 %v1099_v17  ;;  %v1217_v17 = vpop.permute.xlu0 %332 }
 0x2c5   :  { %525 = vmatmul.mubr.bf16.vlgmr.msra.gmra.mxu1 %v490_v2 }
 0x2f3   :  { %v378_v3 = vpop.f32.mrf.mxu1 }
 0x2f4   :  { %v379_v23 = vadd.f32 %v378_v3, %v1217_v17 }
 0x2f5   :  { %v874_v4 = vpop.f32.mrf.mxu1 }
 0x2f6   :  { %v788_v24 = vmul.f32 -1.442695, %v379_v23 }
 0x2f7   :  { %v381_v5 = vpop.f32.mrf.mxu1 }
 0x2f8   :  { %928 = vpow2.f32 %v788_v24 }
 0x2f9   :  { %v875_v6 = vpop.f32.mrf.mxu1 }
 0x305   :  { %v929_v25 = vpop.eup %928 }
 0x306   :  { %v387_v27 = vadd.f32 1.0, %v929_v25 }
 0x308   :  { %930 = vrcp.f32 %v387_v27 }
 0x315   :  { %v931_v40 = vpop.eup %930 }
 0x365   :  { %v1207_v7 = vpop.f32.mrf.mxu1 }
 0x367   :  { %v1209_v8 = vpop.f32.mrf.mxu1 }
 0x368   :  { %v482_v53 = vmul.f32 %v1209_v8, %v1067_v11 }
 0x369   :  { %v443_v9 = vpop.f32.mrf.mxu1 }
 0x36b   :  { %v444_v10 = vpop.f32.mrf.mxu1 }
 0x385   :  { %v846_v12 = vpop.f32.mrf.mxu1 }
 0x387   :  { %v847_v13 = vpop.f32.mrf.mxu1 }
 0x388   :  { %v848_v14 = vadd.f32 %v847_v13, %v846_v12 }
 0x389   :  { %v849_v15 = vpop.f32.mrf.mxu1 }
 0x38a   :  { %v532_v16 = vpack.c.bf16 %v848_v14, %v848_v14 }
 0x38b   :  { %v850_v19 = vpop.f32.mrf.mxu1 }
 0x38c   :  { %v534_v22 = vsel %vm223_vm1, %v532_v16, 0 }
 0x38d   :  { %877 = vmatpush3.bf16.msra.mxu0 %v534_v22 }
 0x38e   :  { %882 = vmatprep.subr.bf16.mxu0 %v940_v20 }
 0x390   :  { %879 = vmatmul.mubr.msk.bf16.vlgmr.msra.gmra.mxu0 %vm219_vm2, %v1130_v32 }
 0x391   :  { %884 = vmatprep.mubr.msk.bf16.mxu0 %vm941_vm0, %v940_v20 }
 0x450   :  { %v570_v26 = vpop.f32.mrf.mxu0 }
 0x451   :  { %v571_v28 = vadd.f32 %v570_v26, %v1137_v33 }
 0x452   :  { %v880_v29 = vpop.f32.mrf.mxu0 }
 0x453   :  { %v576_v30 = vadd.f32 3.0, %v571_v28 }
 0x454   :  { %v573_v31 = vpop.f32.mrf.mxu0 }
 0x455   :  { %v577_v34 = vmax.f32 %v576_v30, 0.0 }
 0x456   :  { %v881_v32 = vpop.f32.mrf.mxu0 }
 0x457   :  { %v578_v35 = vmin.f32 %v577_v34, 6.0 }
 0x459   :  { %v579_v36 = vmul.f32 %v578_v35, %v571_v28 }
 0x45b   :  { %v580_v37 = vmul.f32 0.16666667, %v579_v36 }
 0x45d   :  { %v581_v38 = vpack.c.bf16 %v580_v37, %v580_v37 }
 0x45f   :  { %632 = vrot.lane.b32.xlu1 %v581_v38, %s943_s3  ;;  %v583_v39 = vsel %vm223_vm1, %v581_v38, 0 }
 0x460   :  { %883 = vmatpush3.bf16.msra.mxu0 %v583_v39 }
 0x461   :  { %888 = vmatprep.subr.bf16.mxu0 %v940_v20 }
 0x463   :  { %447 = vrot.lane.b32.xlu1 %v931_v40, %s944_s0  ;;  %885 = vmatmul.mubr.msk.bf16.vlgmr.msra.gmra.mxu0 %vm219_vm2, %v1145_v46 }
 0x464   :  { %890 = vmatprep.mubr.msk.bf16.mxu0 %vm941_vm0, %v940_v20 }
 0x467   :  { %450 = vrot.lane.b32.xlu1 %v931_v40, %s945_s16 }
 0x46b   :  { %453 = vrot.lane.b32.xlu1 %v931_v40, %s946_s17 }
 0x46f   :  { %456 = vrot.lane.b32.xlu1 %v931_v40, %s947_s18 }
 0x473   :  { %459 = vrot.lane.b32.xlu1 %v931_v40, %s948_s19 }
 0x477   :  { %462 = vrot.lane.b32.xlu1 %v931_v40, %s949_s20 }
 0x47b   :  { %465 = vrot.lane.b32.xlu1 %v931_v40, %s943_s3 }
 0x4d1   :  { %v633_v33 = vpop.permute.xlu1 %632 }
 0x4d2   :  { %v635_v20 = vsel %vm223_vm1, %v633_v33, 0 }
 0x4d3   :  { %889 = vmatpush3.bf16.msra.mxu0 %v635_v20 }
 0x4d4   :  { %701 = vmatprep.subr.bf16.mxu0 %v1155_v47 }
 0x4d5   :  { %v448_v41 = vpop.permute.xlu1 %447 }
 0x4d6   :  { %891 = vmatmul.mubr.msk.bf16.vlgmr.msra.gmra.mxu0 %vm219_vm2, %v1161_v50  ;;  %v468_v46 = vsel %vm401_vm3, %v931_v40, %v448_v41 }
 0x4d7   :  { %702 = vmatpush1.bf16.msra.mxu0 %v1166_v51  ;;  %719 = vmatprep.mubr.bf16.mxu0 %v942_v21  ;;  %v481_v51 = vmul.f32 %v1207_v7, %v1104_v18 }
 0x4d9   :  { %v451_v42 = vpop.permute.xlu1 %450 }
 0x4da   :  { %v470_v48 = vsel %vm469_vm4, %v468_v46, %v451_v42 }
 0x4dd   :  { %v454_v43 = vpop.permute.xlu1 %453 }
 0x4de   :  { %v472_v49 = vsel %vm471_vm5, %v470_v48, %v454_v43 }
 0x4e1   :  { %v457_v44 = vpop.permute.xlu1 %456 }
 0x4e2   :  { %v474_v50 = vsel %vm473_vm6, %v472_v49, %v457_v44 }
 0x4e5   :  { %v460_v45 = vpop.permute.xlu1 %459 }
 0x4e6   :  { %v476_v21 = vsel %vm475_vm7, %v474_v50, %v460_v45 }
 0x4e9   :  { %v463_v47 = vpop.permute.xlu1 %462 }
 0x4ea   :  { %v478_v54 = vsel %vm477_vm8, %v476_v21, %v463_v47 }
 0x4ed   :  { %v466_v55 = vpop.permute.xlu1 %465 }
 0x4ee   :  { %v480_v56 = vsel %vm479_vm9, %v478_v54, %v466_v55 }
 0x4ef   :  { %v483_v57 = vmul.f32 %v481_v51, %v480_v56  ;;  %v484_v58 = vmul.f32 %v482_v53, %v480_v56 }
 0x4f1   :  { %485 = vst [vmem:[%s1292_s9] sm:$0xff] %v483_v57  ;;  %486 = vst [vmem:[%s1292_s9 + $0x8] sm:$0xff] %v484_v58 }
 0x523   :  { %v619_v59 = vpop.f32.mrf.mxu0 }
 0x524   :  { %v620_v18 = vadd.f32 %v619_v59, %v1174_v52 }
 0x525   :  { %v886_v60 = vpop.f32.mrf.mxu0 }
 0x526   :  { %v796_v11 = vmul.f32 -1.442695, %v620_v18 }
 0x527   :  { %v622_v62 = vpop.f32.mrf.mxu0 }
 0x528   :  { %932 = vpow2.f32 %v796_v11 }
 0x529   :  { %v887_v63 = vpop.f32.mrf.mxu0 }
 0x535   :  { %v933_v0 = vpop.eup %932 }
 0x536   :  { %v628_v2 = vadd.f32 1.0, %v933_v0 }
 0x538   :  { %934 = vrcp.f32 %v628_v2 }
 0x545   :  { %v935_v3 = vpop.eup %934 }
 0x546   :  { %v683_v4 = vpack.c.bf16 %v935_v3, %v935_v3 }
 0x548   :  { %799 = vmatmul.mubr.msk.bf16.vlgmr.msra.gmra.mxu0 %vm401_vm3, %v683_v4 }
 0x596   :  { %v671_v5 = vpop.f32.mrf.mxu0 }
 0x597   :  { %v672_v6 = vadd.f32 %v671_v5, %v1217_v17 }
 0x598   :  { %v892_v7 = vpop.f32.mrf.mxu0 }
 0x599   :  { %v798_v8 = vmul.f32 -1.442695, %v672_v6 }
 0x59a   :  { %v674_v9 = vpop.f32.mrf.mxu0 }
 0x59b   :  { %936 = vpow2.f32 %v798_v8 }
 0x59c   :  { %v893_v52 = vpop.f32.mrf.mxu0 }
 0x5a8   :  { %v937_v10 = vpop.eup %936 }
 0x5a9   :  { %v680_v12 = vadd.f32 1.0, %v937_v10 }
 0x5ab   :  { %938 = vrcp.f32 %v680_v12 }
 0x5b8   :  { %v939_v13 = vpop.eup %938 }
 0x5b9   :  { %729 = vrot.lane.b32.xlu0 %v939_v13, %s944_s0 }
 0x5bd   :  { %732 = vrot.lane.b32.xlu0 %v939_v13, %s945_s16 }
 0x5c1   :  { %735 = vrot.lane.b32.xlu0 %v939_v13, %s946_s17 }
 0x5c5   :  { %738 = vrot.lane.b32.xlu0 %v939_v13, %s947_s18 }
 0x5c9   :  { %741 = vrot.lane.b32.xlu0 %v939_v13, %s948_s19 }
 0x5cd   :  { %744 = vrot.lane.b32.xlu0 %v939_v13, %s949_s20 }
 0x5d1   :  { %747 = vrot.lane.b32.xlu0 %v939_v13, %s943_s3 }
 0x608   :  { %v721_v14 = vpop.f32.mrf.mxu0 }
 0x609   :  { %v757_v34 = vmul.f32 %v1201_v1, %v721_v14 }
 0x60a   :  { %v723_v15 = vpop.f32.mrf.mxu0 }
 0x60b   :  { %v758_v32 = vmul.f32 %v1180_v61, %v723_v15 }
 0x60c   :  { %v725_v16 = vpop.f32.mrf.mxu0 }
 0x60e   :  { %v726_v19 = vpop.f32.mrf.mxu0 }
 0x62b   :  { %v730_v22 = vpop.permute.xlu0 %729 }
 0x62c   :  { %v750_v26 = vsel %vm401_vm3, %v939_v13, %v730_v22 }
 0x62f   :  { %v733_v17 = vpop.permute.xlu0 %732 }
 0x630   :  { %v751_v27 = vsel %vm469_vm4, %v750_v26, %v733_v17 }
 0x633   :  { %v736_v23 = vpop.permute.xlu0 %735 }
 0x634   :  { %v752_v29 = vsel %vm471_vm5, %v751_v27, %v736_v23 }
 0x637   :  { %v739_v24 = vpop.permute.xlu0 %738 }
 0x638   :  { %v753_v30 = vsel %vm473_vm6, %v752_v29, %v739_v24 }
 0x63b   :  { %v742_v25 = vpop.permute.xlu0 %741 }
 0x63c   :  { %v754_v31 = vsel %vm475_vm7, %v753_v30, %v742_v25 }
 0x63f   :  { %v745_v28 = vpop.permute.xlu0 %744 }
 0x640   :  { %v755_v35 = vsel %vm477_vm8, %v754_v31, %v745_v28 }
 0x643   :  { %v748_v36 = vpop.permute.xlu0 %747 }
 0x644   :  { %v756_v37 = vsel %vm479_vm9, %v755_v35, %v748_v36 }
 0x645   :  { %v759_v38 = vmul.f32 %v757_v34, %v756_v37  ;;  %v760_v39 = vmul.f32 %v758_v32, %v756_v37 }
 0x647   :  { %800 = vst [vmem:[%s1292_s9 + $0x10] sm:$0xff] %v759_v38  ;;  %801 = vst [vmem:[%s1292_s9 + $0x18] sm:$0xff] %v760_v39 }

</bundles_post_ra>
